<compile_context>
chip_gen: v6e
topology: v6e:2x2x1
jax: 0.10.0
libtpu: 0.0.40
codegen_flags: <defaults>
</compile_context>

<pallas_src>
import functools

import jax
import jax.numpy as jnp
from jax import lax
from jax.experimental import pallas as pl
from jax.experimental.pallas import tpu as pltpu

_LANE = 128     # hidden size padded to a multiple of this (lane width)
_SUBLANE = 8    # batch padded to a multiple of this (f32 sublane)


def _round_up(x, m):
    return (x + m - 1) // m * m


def _run_gru_recurrence(xg, len_b, h0, w_hh, b_hn, *, time_block, batch_block):
    """Serial-in-time GRU recurrence (one layer).

    xg:    (Tp, Bp, 3*Hp) f32 precomputed gate pre-activations x@W_ih + folded biases,
           gate order [r | z | n] along the last dim.
    len_b: (Bp, Hp) int32 per-row sequence length broadcast along lanes.
    h0:    (Bp, Hp) f32 initial hidden state.
    w_hh:  (Hp, 3*Hp) f32 fused recurrent weights [r | z | n].
    b_hn:  (1, Hp)  f32 recurrent bias of the n gate (must stay inside r*(.)).
    Returns: hid (Tp, Bp, Hp) per-step hidden (0 at invalid steps), hn (Bp, Hp).
    """
    Tp, Bp, three_hp = xg.shape
    Hp = three_hp // 3
    TT = time_block
    TB = batch_block
    nb, nt = Bp // TB, Tp // TT

    def kernel(len_ref, xg_ref, h0_ref, whh_ref, bhn_ref, hid_ref, hn_ref):
        i = pl.program_id(1)            # time-block index (serial)

        @pl.when(i == 0)
        def _():
            hn_ref[...] = h0_ref[...]   # hn block is resident across time blocks

        w = whh_ref[...]                # (Hp, 3Hp)
        b_n = bhn_ref[...]              # (1, Hp)
        lens = len_ref[...]             # (TB, Hp) int32
        t0 = i * TT

        def step(tt, h_prev):
            # One fused MXU matmul for all three gates.
            g = jnp.dot(h_prev, w, preferred_element_type=jnp.float32)   # (TB, 3Hp)
            xgt = xg_ref[tt]                                             # (TB, 3Hp)
            r = jax.nn.sigmoid(xgt[:, 0 * Hp:1 * Hp] + g[:, 0 * Hp:1 * Hp])
            z = jax.nn.sigmoid(xgt[:, 1 * Hp:2 * Hp] + g[:, 1 * Hp:2 * Hp])
            n = jnp.tanh(xgt[:, 2 * Hp:3 * Hp] + r * (g[:, 2 * Hp:3 * Hp] + b_n))
            h_new = (1.0 - z) * n + z * h_prev
            valid = (t0 + tt) < lens                 # (TB, Hp) bool
            h = jnp.where(valid, h_new, h_prev)      # freeze state past length
            hid_ref[tt] = jnp.where(valid, h, 0.0)   # pad_packed_sequence pads with 0
            return h

        hn_ref[...] = lax.fori_loop(0, TT, step, hn_ref[...], unroll=True)

    grid_spec = pltpu.PrefetchScalarGridSpec(
        num_scalar_prefetch=0,
        grid=(nb, nt),
        in_specs=[
            pl.BlockSpec((TB, Hp), lambda b, i: (b, 0)),             # lengths (lane-dense)
            pl.BlockSpec((TT, TB, 3 * Hp), lambda b, i: (i, b, 0)),  # gate pre-activations
            pl.BlockSpec((TB, Hp), lambda b, i: (b, 0)),             # h0
            pl.BlockSpec((Hp, 3 * Hp), lambda b, i: (0, 0)),         # fused W_hh
            pl.BlockSpec((1, Hp), lambda b, i: (0, 0)),              # b_hh_n
        ],
        out_specs=[
            pl.BlockSpec((TT, TB, Hp), lambda b, i: (i, b, 0)),      # per-step hidden
            pl.BlockSpec((TB, Hp), lambda b, i: (b, 0)),             # running h / h_n
        ],
    )
    # NOTE: for very large H on v7x (64 MiB VMEM), additionally cast the weight
    # operands to bf16 and single-buffer the constant-index weight blocks
    # (pipeline_mode=pl.Buffered) — not needed at these shapes.
    hid, hn = pl.pallas_call(
        kernel,
        out_shape=(
            jax.ShapeDtypeStruct((Tp, Bp, Hp), jnp.float32),
            jax.ShapeDtypeStruct((Bp, Hp), jnp.float32),
        ),
        grid_spec=grid_spec,
        compiler_params=pltpu.CompilerParams(
            dimension_semantics=("parallel", "arbitrary"),
            vmem_limit_bytes=64 * 1024 * 1024,
        ),
    )(len_b, xg, h0, w_hh, b_hn)
    return hid, hn


def _pack_layer_params(p, H, Hp, d_in_target):
    """Fuse per-gate weights into lane-aligned [r|z|n] slabs and fold biases."""
    w_ih, w_hh = p["w_ih"], p["w_hh"]              # (3, d_in, H), (3, H, H)
    d_in = w_ih.shape[1]
    b_ih = p["b_ih"].reshape(3, H)
    b_hh = p["b_hh"].reshape(3, H)
    ph, pd = Hp - H, d_in_target - d_in
    w_ih_p = jnp.pad(w_ih, ((0, 0), (0, pd), (0, ph)))          # (3, Din_t, Hp)
    w_hh_p = jnp.pad(w_hh, ((0, 0), (0, ph), (0, ph)))          # (3, Hp, Hp)
    w_ih_cat = jnp.transpose(w_ih_p, (1, 0, 2)).reshape(d_in_target, 3 * Hp)
    w_hh_cat = jnp.transpose(w_hh_p, (1, 0, 2)).reshape(Hp, 3 * Hp)
    # b_ih (all gates) and b_hh of the r/z gates are per-timestep constants ->
    # fold them into the hoisted input projection. Only b_hh_n must remain
    # inside the r * (h W_hh_n + b_hh_n) term.
    b_fold = jnp.stack([b_ih[0] + b_hh[0], b_ih[1] + b_hh[1], b_ih[2]], axis=0)
    b_fold = jnp.pad(b_fold, ((0, 0), (0, ph))).reshape(3 * Hp)
    b_hn = jnp.pad(b_hh[2], (0, ph)).reshape(1, Hp)
    return w_ih_cat, w_hh_cat, b_fold, b_hn


@functools.partial(jax.jit, static_argnames=("time_block",))
def gru_forward(x, length, params, h_0=None, *, time_block=8):
    """Mirrors GRU.forward: returns (hidden (B,T,H), output (B,H), h_n (L,B,H))."""
    B, T, D = x.shape
    L = len(params)
    H = params[0]["w_hh"].shape[-1]
    Hp = _round_up(H, _LANE)
    Bp = _round_up(B, _SUBLANE)
    Tp = _round_up(T, time_block)

    if h_0 is None:
        h_0 = jnp.zeros((L, B, H), jnp.float32)

    # time-major; pad B (sublane), T (time blocking); padded rows get length 0.
    x_tbd = jnp.transpose(x, (1, 0, 2)).astype(jnp.float32)          # (T, B, D)
    x_tbd = jnp.pad(x_tbd, ((0, Tp - T), (0, Bp - B), (0, 0)))
    len_p = jnp.pad(length.astype(jnp.int32), (0, Bp - B))
    len_b = jnp.broadcast_to(len_p[:, None], (Bp, Hp))
    h0_p = jnp.pad(h_0.astype(jnp.float32),
                   ((0, 0), (0, Bp - B), (0, Hp - H)))               # (L, Bp, Hp)

    layer_in = x_tbd
    h_n_list = []
    for l in range(L):
        d_in = layer_in.shape[-1]
        w_ih_cat, w_hh_cat, b_fold, b_hn = _pack_layer_params(params[l], H, Hp, d_in)
        # Hoisted input projection: one big, fully-parallel matmul over ALL
        # timesteps (left to XLA, runs near MXU roofline). The serial Pallas
        # recurrence then only does one (B,Hp)x(Hp,3Hp) matmul per step.
        xg = jnp.dot(layer_in.reshape(Tp * Bp, d_in), w_ih_cat,
                     preferred_element_type=jnp.float32)
        xg = (xg + b_fold).reshape(Tp, Bp, 3 * Hp)
        layer_in, hn = _run_gru_recurrence(
            xg, len_b, h0_p[l], w_hh_cat, b_hn,
            time_block=time_block, batch_block=Bp)
        h_n_list.append(hn[:B, :H])
    # TODO(synk): inter-layer dropout (nn.GRU dropout>0, training mode) not applied.

    hidden = jnp.transpose(layer_in[:T, :B, :H], (1, 0, 2))          # (B, T, H)
    h_n_all = jnp.stack(h_n_list, axis=0)                            # (L, B, H)
    output = h_n_all[-1]                                             # (B, H)
    return hidden, output, h_n_all


def init_gru_params(key, dim_word, dim_h, num_layers):
    """Deterministic init matching nn.GRU param shapes (gate order r,z,n)."""
    params = []
    bound = 1.0 / jnp.sqrt(jnp.float32(dim_h))
    for l in range(num_layers):
        d_in = dim_word if l == 0 else dim_h
        key, k1, k2, k3, k4 = jax.random.split(key, 5)
        params.append({
            "w_ih": jax.random.uniform(k1, (3, d_in, dim_h), jnp.float32, -bound, bound),
            "w_hh": jax.random.uniform(k2, (3, dim_h, dim_h), jnp.float32, -bound, bound),
            "b_ih": jax.random.uniform(k3, (3, 1, dim_h), jnp.float32, -bound, bound),
            "b_hh": jax.random.uniform(k4, (3, 1, dim_h), jnp.float32, -bound, bound),
        })
    return params


def gru_reference(x, length, params, h_0):
    """Pure-JAX reference with identical masking semantics (for validation)."""
    B, T, _ = x.shape
    L = len(params)
    h = [h_0[l] for l in range(L)]
    steps = []
    for t in range(T):
        inp = x[:, t, :]
        mask = (t < length).astype(jnp.float32)[:, None]
        for l in range(L):
            p = params[l]
            gi = [inp @ p["w_ih"][g] + p["b_ih"][g] for g in range(3)]
            gh = [h[l] @ p["w_hh"][g] + p["b_hh"][g] for g in range(3)]
            r = jax.nn.sigmoid(gi[0] + gh[0])
            z = jax.nn.sigmoid(gi[1] + gh[1])
            n = jnp.tanh(gi[2] + r * gh[2])
            h_new = (1.0 - z) * n + z * h[l]
            h[l] = mask * h_new + (1.0 - mask) * h[l]
            inp = mask * h[l]
        steps.append(inp)
    hidden = jnp.stack(steps, axis=1)
    h_n = jnp.stack(h, axis=0)
    return hidden, h_n[-1], h_n


if __name__ == "__main__":
    dim_word, dim_h, num_layers = 16, 32, 2
    B, T = 2, 8

    key = jax.random.PRNGKey(0)
    k_param, k_x = jax.random.split(key)
    params = init_gru_params(k_param, dim_word, dim_h, num_layers)

    x = jax.random.normal(k_x, (B, T, dim_word), jnp.float32)
    length = jnp.array([8, 5], dtype=jnp.int32)

    # time_block=4 -> grid has 2 serial time blocks (exercises hn residency).
    hidden, output, h_n = gru_forward(x, length, params, time_block=4)
    jax.block_until_ready((hidden, output, h_n))

    h0 = jnp.zeros((num_layers, B, dim_h), jnp.float32)
    hid_ref, out_ref, hn_ref = gru_reference(x, length, params, h0)
    assert jnp.allclose(hidden, hid_ref, atol=1e-4, rtol=1e-4)
    assert jnp.allclose(output, out_ref, atol=1e-4, rtol=1e-4)
    assert jnp.allclose(h_n, hn_ref, atol=1e-4, rtol=1e-4)

    print("KERNEL_OK")
</pallas_src>

<mosaic_0001>
module attributes {stable_mosaic.version = 11 : i64} {
  func.func @kernel(%arg0: i32, %arg1: i32, %arg2: memref<8x128xi32, #tpu.memory_space<vmem>>, %arg3: memref<4x8x384xf32, #tpu.memory_space<vmem>>, %arg4: memref<8x128xf32, #tpu.memory_space<vmem>>, %arg5: memref<128x384xf32, #tpu.memory_space<vmem>>, %arg6: memref<1x128xf32, #tpu.memory_space<vmem>>, %arg7: memref<4x8x128xf32, #tpu.memory_space<vmem>>, %arg8: memref<8x128xf32, #tpu.memory_space<vmem>>) attributes {dimension_semantics = [#tpu.dimension_semantics<parallel>, #tpu.dimension_semantics<arbitrary>], iteration_bounds = array<i64: 1, 2>, scalar_prefetch = 0 : i64, scratch_operands = 0 : i64, tpu.core_type = #tpu.core_type<tc>, window_params = [{transform_indices = @transform_0, window_bounds = array<i64: 8, 128>}, {transform_indices = @transform_1, window_bounds = array<i64: 4, 8, 384>}, {transform_indices = @transform_2, window_bounds = array<i64: 8, 128>}, {pipeline_mode = #tpu.pipeline_mode<synchronous>, transform_indices = @transform_3, window_bounds = array<i64: 128, 384>}, {pipeline_mode = #tpu.pipeline_mode<synchronous>, transform_indices = @transform_4, window_bounds = array<i64: 1, 128>}, {transform_indices = @transform_5, window_bounds = array<i64: 4, 8, 128>}, {transform_indices = @transform_6, window_bounds = array<i64: 8, 128>}]} {
    %c0_i32 = arith.constant 0 : i32
    %0 = arith.cmpi eq, %arg1, %c0_i32 : i32
    %1 = arith.extui %0 : i1 to i32
    %c0_i32_0 = arith.constant 0 : i32
    %2 = arith.cmpi ne, %1, %c0_i32_0 : i32
    scf.if %2 {
      %c0_47 = arith.constant 0 : index
      %c0_48 = arith.constant 0 : index
      %177 = vector.load %arg4[%c0_47, %c0_48] : memref<8x128xf32, #tpu.memory_space<vmem>>, vector<8x128xf32>
      %c0_49 = arith.constant 0 : index
      %c0_50 = arith.constant 0 : index
      %178 = vector.load %arg8[%c0_49, %c0_50] : memref<8x128xf32, #tpu.memory_space<vmem>>, vector<8x128xf32>
      tpu.vector_store %arg8[%c0_49, %c0_50], %177 {strides = array<i32>} : memref<8x128xf32, #tpu.memory_space<vmem>>, vector<8x128xf32>,
    } else {
    }
    %c0 = arith.constant 0 : index
    %c0_1 = arith.constant 0 : index
    %3 = vector.load %arg5[%c0, %c0_1] : memref<128x384xf32, #tpu.memory_space<vmem>>, vector<128x384xf32>
    %c0_2 = arith.constant 0 : index
    %c0_3 = arith.constant 0 : index
    %4 = vector.load %arg6[%c0_2, %c0_3] : memref<1x128xf32, #tpu.memory_space<vmem>>, vector<1x128xf32>
    %c0_4 = arith.constant 0 : index
    %c0_5 = arith.constant 0 : index
    %5 = vector.load %arg2[%c0_4, %c0_5] : memref<8x128xi32, #tpu.memory_space<vmem>>, vector<8x128xi32>
    %c4_i32 = arith.constant 4 : i32
    %6 = arith.muli %arg1, %c4_i32 : i32
    %c0_6 = arith.constant 0 : index
    %c0_7 = arith.constant 0 : index
    %7 = vector.load %arg8[%c0_6, %c0_7] : memref<8x128xf32, #tpu.memory_space<vmem>>, vector<8x128xf32>
    %c0_i32_8 = arith.constant 0 : i32
    %cst = arith.constant dense<0.000000e+00> : vector<8x384xf32>
    %8 = tpu.matmul %7, %3, %cst {dimension_numbers = #tpu.dot_dimension_numbers<[1], [0], [0], [1], [0, 0, 1, 1], [], []>} : vector<8x128xf32>, vector<128x384xf32>, vector<8x384xf32> -> vector<8x384xf32>
    %9 = arith.index_cast %c0_i32_8 : i32 to index
    %c0_9 = arith.constant 0 : index
    %c0_10 = arith.constant 0 : index
    %10 = vector.load %arg3[%9, %c0_9, %c0_10] : memref<4x8x384xf32, #tpu.memory_space<vmem>>, vector<1x8x384xf32>
    %11 = vector.shape_cast %10 : vector<1x8x384xf32> to vector<8x384xf32>
    %12 = vector.extract_strided_slice %11 {offsets = [0, 0], sizes = [8, 128], strides = [1, 1]} : vector<8x384xf32> to vector<8x128xf32>
    %13 = vector.extract_strided_slice %8 {offsets = [0, 0], sizes = [8, 128], strides = [1, 1]} : vector<8x384xf32> to vector<8x128xf32>
    %14 = arith.addf %12, %13 : vector<8x128xf32>
    %15 = arith.negf %14 : vector<8x128xf32>
    %16 = math.exp %15 : vector<8x128xf32>
    %cst_11 = arith.constant 1.000000e+00 : f32
    %17 = vector.broadcast %cst_11 : f32 to vector<8x128xf32>
    %18 = arith.addf %17, %16 : vector<8x128xf32>
    %19 = arith.divf %17, %18 : vector<8x128xf32>
    %20 = vector.extract_strided_slice %11 {offsets = [0, 128], sizes = [8, 128], strides = [1, 1]} : vector<8x384xf32> to vector<8x128xf32>
    %21 = vector.extract_strided_slice %8 {offsets = [0, 128], sizes = [8, 128], strides = [1, 1]} : vector<8x384xf32> to vector<8x128xf32>
    %22 = arith.addf %20, %21 : vector<8x128xf32>
    %23 = arith.negf %22 : vector<8x128xf32>
    %24 = math.exp %23 : vector<8x128xf32>
    %cst_12 = arith.constant 1.000000e+00 : f32
    %25 = vector.broadcast %cst_12 : f32 to vector<8x128xf32>
    %26 = arith.addf %25, %24 : vector<8x128xf32>
    %27 = arith.divf %25, %26 : vector<8x128xf32>
    %28 = vector.extract_strided_slice %11 {offsets = [0, 256], sizes = [8, 128], strides = [1, 1]} : vector<8x384xf32> to vector<8x128xf32>
    %29 = vector.extract_strided_slice %8 {offsets = [0, 256], sizes = [8, 128], strides = [1, 1]} : vector<8x384xf32> to vector<8x128xf32>
    %30 = vector.broadcast %4 : vector<1x128xf32> to vector<8x128xf32>
    %31 = arith.addf %29, %30 : vector<8x128xf32>
    %32 = arith.mulf %19, %31 : vector<8x128xf32>
    %33 = arith.addf %28, %32 : vector<8x128xf32>
    %34 = math.tanh %33 : vector<8x128xf32>
    %cst_13 = arith.constant 1.000000e+00 : f32
    %35 = vector.broadcast %cst_13 : f32 to vector<8x128xf32>
    %36 = arith.subf %35, %27 : vector<8x128xf32>
    %37 = arith.mulf %36, %34 : vector<8x128xf32>
    %38 = arith.mulf %27, %7 : vector<8x128xf32>
    %39 = arith.addf %37, %38 : vector<8x128xf32>
    %40 = arith.addi %6, %c0_i32_8 : i32
    %41 = vector.broadcast %40 : i32 to vector<8x128xi32>
    %42 = arith.cmpi slt, %41, %5 : vector<8x128xi32>
    %43 = arith.select %42, %39, %7 : vector<8x128xi1>, vector<8x128xf32>
    %cst_14 = arith.constant 0.000000e+00 : f32
    %44 = vector.broadcast %cst_14 : f32 to vector<8x128xf32>
    %45 = arith.select %42, %43, %44 : vector<8x128xi1>, vector<8x128xf32>
    %46 = arith.index_cast %c0_i32_8 : i32 to index
    %c0_15 = arith.constant 0 : index
    %c0_16 = arith.constant 0 : index
    %47 = vector.load %arg7[%46, %c0_15, %c0_16] : memref<4x8x128xf32, #tpu.memory_space<vmem>>, vector<1x8x128xf32>
    %48 = vector.shape_cast %47 : vector<1x8x128xf32> to vector<8x128xf32>
    %49 = vector.shape_cast %45 : vector<8x128xf32> to vector<1x8x128xf32>
    tpu.vector_store %arg7[%46, %c0_15, %c0_16], %49 {strides = array<i32>} : memref<4x8x128xf32, #tpu.memory_space<vmem>>, vector<1x8x128xf32>,
    %c1_i32 = arith.constant 1 : i32
    %cst_17 = arith.constant dense<0.000000e+00> : vector<8x384xf32>
    %50 = tpu.matmul %43, %3, %cst_17 {dimension_numbers = #tpu.dot_dimension_numbers<[1], [0], [0], [1], [0, 0, 1, 1], [], []>} : vector<8x128xf32>, vector<128x384xf32>, vector<8x384xf32> -> vector<8x384xf32>
    %51 = arith.index_cast %c1_i32 : i32 to index
    %c0_18 = arith.constant 0 : index
    %c0_19 = arith.constant 0 : index
    %52 = vector.load %arg3[%51, %c0_18, %c0_19] : memref<4x8x384xf32, #tpu.memory_space<vmem>>, vector<1x8x384xf32>
    %53 = vector.shape_cast %52 : vector<1x8x384xf32> to vector<8x384xf32>
    %54 = vector.extract_strided_slice %53 {offsets = [0, 0], sizes = [8, 128], strides = [1, 1]} : vector<8x384xf32> to vector<8x128xf32>
    %55 = vector.extract_strided_slice %50 {offsets = [0, 0], sizes = [8, 128], strides = [1, 1]} : vector<8x384xf32> to vector<8x128xf32>
    %56 = arith.addf %54, %55 : vector<8x128xf32>
    %57 = arith.negf %56 : vector<8x128xf32>
    %58 = math.exp %57 : vector<8x128xf32>
    %cst_20 = arith.constant 1.000000e+00 : f32
    %59 = vector.broadcast %cst_20 : f32 to vector<8x128xf32>
    %60 = arith.addf %59, %58 : vector<8x128xf32>
    %61 = arith.divf %59, %60 : vector<8x128xf32>
    %62 = vector.extract_strided_slice %53 {offsets = [0, 128], sizes = [8, 128], strides = [1, 1]} : vector<8x384xf32> to vector<8x128xf32>
    %63 = vector.extract_strided_slice %50 {offsets = [0, 128], sizes = [8, 128], strides = [1, 1]} : vector<8x384xf32> to vector<8x128xf32>
    %64 = arith.addf %62, %63 : vector<8x128xf32>
    %65 = arith.negf %64 : vector<8x128xf32>
    %66 = math.exp %65 : vector<8x128xf32>
    %cst_21 = arith.constant 1.000000e+00 : f32
    %67 = vector.broadcast %cst_21 : f32 to vector<8x128xf32>
    %68 = arith.addf %67, %66 : vector<8x128xf32>
    %69 = arith.divf %67, %68 : vector<8x128xf32>
    %70 = vector.extract_strided_slice %53 {offsets = [0, 256], sizes = [8, 128], strides = [1, 1]} : vector<8x384xf32> to vector<8x128xf32>
    %71 = vector.extract_strided_slice %50 {offsets = [0, 256], sizes = [8, 128], strides = [1, 1]} : vector<8x384xf32> to vector<8x128xf32>
    %72 = vector.broadcast %4 : vector<1x128xf32> to vector<8x128xf32>
    %73 = arith.addf %71, %72 : vector<8x128xf32>
    %74 = arith.mulf %61, %73 : vector<8x128xf32>
    %75 = arith.addf %70, %74 : vector<8x128xf32>
    %76 = math.tanh %75 : vector<8x128xf32>
    %cst_22 = arith.constant 1.000000e+00 : f32
    %77 = vector.broadcast %cst_22 : f32 to vector<8x128xf32>
    %78 = arith.subf %77, %69 : vector<8x128xf32>
    %79 = arith.mulf %78, %76 : vector<8x128xf32>
    %80 = arith.mulf %69, %43 : vector<8x128xf32>
    %81 = arith.addf %79, %80 : vector<8x128xf32>
    %82 = arith.addi %6, %c1_i32 : i32
    %83 = vector.broadcast %82 : i32 to vector<8x128xi32>
    %84 = arith.cmpi slt, %83, %5 : vector<8x128xi32>
    %85 = arith.select %84, %81, %43 : vector<8x128xi1>, vector<8x128xf32>
    %cst_23 = arith.constant 0.000000e+00 : f32
    %86 = vector.broadcast %cst_23 : f32 to vector<8x128xf32>
    %87 = arith.select %84, %85, %86 : vector<8x128xi1>, vector<8x128xf32>
    %88 = arith.index_cast %c1_i32 : i32 to index
    %c0_24 = arith.constant 0 : index
    %c0_25 = arith.constant 0 : index
    %89 = vector.load %arg7[%88, %c0_24, %c0_25] : memref<4x8x128xf32, #tpu.memory_space<vmem>>, vector<1x8x128xf32>
    %90 = vector.shape_cast %89 : vector<1x8x128xf32> to vector<8x128xf32>
    %91 = vector.shape_cast %87 : vector<8x128xf32> to vector<1x8x128xf32>
    tpu.vector_store %arg7[%88, %c0_24, %c0_25], %91 {strides = array<i32>} : memref<4x8x128xf32, #tpu.memory_space<vmem>>, vector<1x8x128xf32>,
    %c2_i32 = arith.constant 2 : i32
    %cst_26 = arith.constant dense<0.000000e+00> : vector<8x384xf32>
    %92 = tpu.matmul %85, %3, %cst_26 {dimension_numbers = #tpu.dot_dimension_numbers<[1], [0], [0], [1], [0, 0, 1, 1], [], []>} : vector<8x128xf32>, vector<128x384xf32>, vector<8x384xf32> -> vector<8x384xf32>
    %93 = arith.index_cast %c2_i32 : i32 to index
    %c0_27 = arith.constant 0 : index
    %c0_28 = arith.constant 0 : index
    %94 = vector.load %arg3[%93, %c0_27, %c0_28] : memref<4x8x384xf32, #tpu.memory_space<vmem>>, vector<1x8x384xf32>
    %95 = vector.shape_cast %94 : vector<1x8x384xf32> to vector<8x384xf32>
    %96 = vector.extract_strided_slice %95 {offsets = [0, 0], sizes = [8, 128], strides = [1, 1]} : vector<8x384xf32> to vector<8x128xf32>
    %97 = vector.extract_strided_slice %92 {offsets = [0, 0], sizes = [8, 128], strides = [1, 1]} : vector<8x384xf32> to vector<8x128xf32>
    %98 = arith.addf %96, %97 : vector<8x128xf32>
    %99 = arith.negf %98 : vector<8x128xf32>
    %100 = math.exp %99 : vector<8x128xf32>
    %cst_29 = arith.constant 1.000000e+00 : f32
    %101 = vector.broadcast %cst_29 : f32 to vector<8x128xf32>
    %102 = arith.addf %101, %100 : vector<8x128xf32>
    %103 = arith.divf %101, %102 : vector<8x128xf32>
    %104 = vector.extract_strided_slice %95 {offsets = [0, 128], sizes = [8, 128], strides = [1, 1]} : vector<8x384xf32> to vector<8x128xf32>
    %105 = vector.extract_strided_slice %92 {offsets = [0, 128], sizes = [8, 128], strides = [1, 1]} : vector<8x384xf32> to vector<8x128xf32>
    %106 = arith.addf %104, %105 : vector<8x128xf32>
    %107 = arith.negf %106 : vector<8x128xf32>
    %108 = math.exp %107 : vector<8x128xf32>
    %cst_30 = arith.constant 1.000000e+00 : f32
    %109 = vector.broadcast %cst_30 : f32 to vector<8x128xf32>
    %110 = arith.addf %109, %108 : vector<8x128xf32>
    %111 = arith.divf %109, %110 : vector<8x128xf32>
    %112 = vector.extract_strided_slice %95 {offsets = [0, 256], sizes = [8, 128], strides = [1, 1]} : vector<8x384xf32> to vector<8x128xf32>
    %113 = vector.extract_strided_slice %92 {offsets = [0, 256], sizes = [8, 128], strides = [1, 1]} : vector<8x384xf32> to vector<8x128xf32>
    %114 = vector.broadcast %4 : vector<1x128xf32> to vector<8x128xf32>
    %115 = arith.addf %113, %114 : vector<8x128xf32>
    %116 = arith.mulf %103, %115 : vector<8x128xf32>
    %117 = arith.addf %112, %116 : vector<8x128xf32>
    %118 = math.tanh %117 : vector<8x128xf32>
    %cst_31 = arith.constant 1.000000e+00 : f32
    %119 = vector.broadcast %cst_31 : f32 to vector<8x128xf32>
    %120 = arith.subf %119, %111 : vector<8x128xf32>
    %121 = arith.mulf %120, %118 : vector<8x128xf32>
    %122 = arith.mulf %111, %85 : vector<8x128xf32>
    %123 = arith.addf %121, %122 : vector<8x128xf32>
    %124 = arith.addi %6, %c2_i32 : i32
    %125 = vector.broadcast %124 : i32 to vector<8x128xi32>
    %126 = arith.cmpi slt, %125, %5 : vector<8x128xi32>
    %127 = arith.select %126, %123, %85 : vector<8x128xi1>, vector<8x128xf32>
    %cst_32 = arith.constant 0.000000e+00 : f32
    %128 = vector.broadcast %cst_32 : f32 to vector<8x128xf32>
    %129 = arith.select %126, %127, %128 : vector<8x128xi1>, vector<8x128xf32>
    %130 = arith.index_cast %c2_i32 : i32 to index
    %c0_33 = arith.constant 0 : index
    %c0_34 = arith.constant 0 : index
    %131 = vector.load %arg7[%130, %c0_33, %c0_34] : memref<4x8x128xf32, #tpu.memory_space<vmem>>, vector<1x8x128xf32>
    %132 = vector.shape_cast %131 : vector<1x8x128xf32> to vector<8x128xf32>
    %133 = vector.shape_cast %129 : vector<8x128xf32> to vector<1x8x128xf32>
    tpu.vector_store %arg7[%130, %c0_33, %c0_34], %133 {strides = array<i32>} : memref<4x8x128xf32, #tpu.memory_space<vmem>>, vector<1x8x128xf32>,
    %c3_i32 = arith.constant 3 : i32
    %cst_35 = arith.constant dense<0.000000e+00> : vector<8x384xf32>
    %134 = tpu.matmul %127, %3, %cst_35 {dimension_numbers = #tpu.dot_dimension_numbers<[1], [0], [0], [1], [0, 0, 1, 1], [], []>} : vector<8x128xf32>, vector<128x384xf32>, vector<8x384xf32> -> vector<8x384xf32>
    %135 = arith.index_cast %c3_i32 : i32 to index
    %c0_36 = arith.constant 0 : index
    %c0_37 = arith.constant 0 : index
    %136 = vector.load %arg3[%135, %c0_36, %c0_37] : memref<4x8x384xf32, #tpu.memory_space<vmem>>, vector<1x8x384xf32>
    %137 = vector.shape_cast %136 : vector<1x8x384xf32> to vector<8x384xf32>
    %138 = vector.extract_strided_slice %137 {offsets = [0, 0], sizes = [8, 128], strides = [1, 1]} : vector<8x384xf32> to vector<8x128xf32>
    %139 = vector.extract_strided_slice %134 {offsets = [0, 0], sizes = [8, 128], strides = [1, 1]} : vector<8x384xf32> to vector<8x128xf32>
    %140 = arith.addf %138, %139 : vector<8x128xf32>
    %141 = arith.negf %140 : vector<8x128xf32>
    %142 = math.exp %141 : vector<8x128xf32>
    %cst_38 = arith.constant 1.000000e+00 : f32
    %143 = vector.broadcast %cst_38 : f32 to vector<8x128xf32>
    %144 = arith.addf %143, %142 : vector<8x128xf32>
    %145 = arith.divf %143, %144 : vector<8x128xf32>
    %146 = vector.extract_strided_slice %137 {offsets = [0, 128], sizes = [8, 128], strides = [1, 1]} : vector<8x384xf32> to vector<8x128xf32>
    %147 = vector.extract_strided_slice %134 {offsets = [0, 128], sizes = [8, 128], strides = [1, 1]} : vector<8x384xf32> to vector<8x128xf32>
    %148 = arith.addf %146, %147 : vector<8x128xf32>
    %149 = arith.negf %148 : vector<8x128xf32>
    %150 = math.exp %149 : vector<8x128xf32>
    %cst_39 = arith.constant 1.000000e+00 : f32
    %151 = vector.broadcast %cst_39 : f32 to vector<8x128xf32>
    %152 = arith.addf %151, %150 : vector<8x128xf32>
    %153 = arith.divf %151, %152 : vector<8x128xf32>
    %154 = vector.extract_strided_slice %137 {offsets = [0, 256], sizes = [8, 128], strides = [1, 1]} : vector<8x384xf32> to vector<8x128xf32>
    %155 = vector.extract_strided_slice %134 {offsets = [0, 256], sizes = [8, 128], strides = [1, 1]} : vector<8x384xf32> to vector<8x128xf32>
    %156 = vector.broadcast %4 : vector<1x128xf32> to vector<8x128xf32>
    %157 = arith.addf %155, %156 : vector<8x128xf32>
    %158 = arith.mulf %145, %157 : vector<8x128xf32>
    %159 = arith.addf %154, %158 : vector<8x128xf32>
    %160 = math.tanh %159 : vector<8x128xf32>
    %cst_40 = arith.constant 1.000000e+00 : f32
    %161 = vector.broadcast %cst_40 : f32 to vector<8x128xf32>
    %162 = arith.subf %161, %153 : vector<8x128xf32>
    %163 = arith.mulf %162, %160 : vector<8x128xf32>
    %164 = arith.mulf %153, %127 : vector<8x128xf32>
    %165 = arith.addf %163, %164 : vector<8x128xf32>
    %166 = arith.addi %6, %c3_i32 : i32
    %167 = vector.broadcast %166 : i32 to vector<8x128xi32>
    %168 = arith.cmpi slt, %167, %5 : vector<8x128xi32>
    %169 = arith.select %168, %165, %127 : vector<8x128xi1>, vector<8x128xf32>
    %cst_41 = arith.constant 0.000000e+00 : f32
    %170 = vector.broadcast %cst_41 : f32 to vector<8x128xf32>
    %171 = arith.select %168, %169, %170 : vector<8x128xi1>, vector<8x128xf32>
    %172 = arith.index_cast %c3_i32 : i32 to index
    %c0_42 = arith.constant 0 : index
    %c0_43 = arith.constant 0 : index
    %173 = vector.load %arg7[%172, %c0_42, %c0_43] : memref<4x8x128xf32, #tpu.memory_space<vmem>>, vector<1x8x128xf32>
    %174 = vector.shape_cast %173 : vector<1x8x128xf32> to vector<8x128xf32>
    %175 = vector.shape_cast %171 : vector<8x128xf32> to vector<1x8x128xf32>
    tpu.vector_store %arg7[%172, %c0_42, %c0_43], %175 {strides = array<i32>} : memref<4x8x128xf32, #tpu.memory_space<vmem>>, vector<1x8x128xf32>,
    %c4_i32_44 = arith.constant 4 : i32
    %c0_45 = arith.constant 0 : index
    %c0_46 = arith.constant 0 : index
    %176 = vector.load %arg8[%c0_45, %c0_46] : memref<8x128xf32, #tpu.memory_space<vmem>>, vector<8x128xf32>
    tpu.vector_store %arg8[%c0_45, %c0_46], %169 {strides = array<i32>} : memref<8x128xf32, #tpu.memory_space<vmem>>, vector<8x128xf32>,
    return
  }
  func.func @transform_0(%arg0: i32, %arg1: i32) -> (i32, i32) {
    %c0_i32 = arith.constant 0 : i32
    %c0_i32_0 = arith.constant 0 : i32
    return %arg0, %c0_i32 : i32, i32
  }
  func.func @transform_1(%arg0: i32, %arg1: i32) -> (i32, i32, i32) {
    %c0_i32 = arith.constant 0 : i32
    %c0_i32_0 = arith.constant 0 : i32
    return %arg1, %arg0, %c0_i32 : i32, i32, i32
  }
  func.func @transform_2(%arg0: i32, %arg1: i32) -> (i32, i32) {
    %c0_i32 = arith.constant 0 : i32
    %c0_i32_0 = arith.constant 0 : i32
    return %arg0, %c0_i32 : i32, i32
  }
  func.func @transform_3(%arg0: i32, %arg1: i32) -> (i32, i32) {
    %c0_i32 = arith.constant 0 : i32
    %c0_i32_0 = arith.constant 0 : i32
    %c0_i32_1 = arith.constant 0 : i32
    return %c0_i32, %c0_i32_0 : i32, i32
  }
  func.func @transform_4(%arg0: i32, %arg1: i32) -> (i32, i32) {
    %c0_i32 = arith.constant 0 : i32
    %c0_i32_0 = arith.constant 0 : i32
    %c0_i32_1 = arith.constant 0 : i32
    return %c0_i32, %c0_i32_0 : i32, i32
  }
  func.func @transform_5(%arg0: i32, %arg1: i32) -> (i32, i32, i32) {
    %c0_i32 = arith.constant 0 : i32
    %c0_i32_0 = arith.constant 0 : i32
    return %arg1, %arg0, %c0_i32 : i32, i32, i32
  }
  func.func @transform_6(%arg0: i32, %arg1: i32) -> (i32, i32) {
    %c0_i32 = arith.constant 0 : i32
    %c0_i32_0 = arith.constant 0 : i32
    return %arg0, %c0_i32 : i32, i32
  }
}

</mosaic_0001>

<bundles_post_ra>
// kernel: gru_forward.2
= control target key start
LH: loop header
LB: loop body
LE: loop exit
PB: predicated region body
PF: predicated region fallthrough
CT: control target
= control target key end

     0   :  { %s1610_s21 = smov 0   ;;  %s1612_s22 = smov 0   ;;  %s2227_s0 = inlined_call_operand.vmem [shape: s32[8,128], index: 0, kind: input, shape index: {}]   ;;  %s2228_s1 = inlined_call_operand.vmem [shape: f32[8,8,384], index: 1, kind: input, shape index: {}]   ;;  %s2229_s2 = inlined_call_operand.vmem [shape: f32[8,128], index: 2, kind: input, shape index: {}]   ;;  %s2230_s3 = inlined_call_operand.vmem [shape: f32[128,384], index: 3, kind: input, shape index: {}]   ;;  %s2231_s4 = inlined_call_operand.vmem [shape: f32[1,128], index: 4, kind: input, shape index: {}]   ;;  %s2232_s5 = inlined_call_operand.vmem [shape: f32[8,8,128], index: 5, kind: output, shape index: {0}]   ;;  %s2233_s6 = inlined_call_operand.vmem [shape: f32[8,128], index: 6, kind: output, shape index: {1}]  }
   0x1   :  { %s1614_s23 = smov 0  }
   0x2 LB: > { %s26_s24 = sadd.s32 1, %s1567_s22  ;;  %p1243_p0 = scmp.ge.s32.totalorder %s1571_s23, 1  ;;  %s1571_s23 = sphi %s1614_s23, %s17_s23   ;;  %s1567_s22 = sphi %s1612_s22, %s2250_s22   ;;  %s1563_s21 = sphi %s1610_s21, %s2249_s21  }
   0x3   : > { %p27_p1 = scmp.ge.s32.totalorder %s26_s24, 2  ;;  %p255_p2 = scmp.lt.s32.totalorder %s1571_s23, 3 }
   0x5   : > { %s2252_s24 = smov (%p27_p1, %s26_s24), 0  ;;  %p256_p3 = pnand %p1243_p0, %p255_p2 }
   0x7   : > { %259 = sbr.rel (%p256_p3) target bundleno = 1057 (0x421), region = 40 }
   0xc   : > { %s1628_s25 = sshll.u32 %s1563_s21, 2  ;;  %p1248_p5 = scmp.ne.s32.totalorder %s1563_s21, 0 }
   0xd   : > { %p310_p4 = scmp.lt.s32.totalorder %s1628_s25, 7 }
   0xf   : > { %s311_s26 = scalar_select %p310_p4, %s1628_s25, 7 }
  0x10   : > { %340 = sbr.rel (%p1248_p5) target bundleno = 23 (0x17), region = 44 }
  0x11   : > { %s1482_s27 = smul.u32 24, %s311_s26  ;;  %s1247_s28 = sshll.u32 %s311_s26, 3 }
  0x12   : > { %s1635_s7 = scalar_lea.vmem %s2232_s5, %s1247_s28 }
  0x13   : > { %s1640_s10 = scalar_lea.vmem %s2228_s1, %s1482_s27 }
  0x15   : > { %v341_v0 = vld [vmem:[%s2229_s2] sm:$0xff] }
  0x16   : > { %342 = vst [vmem:[%s2233_s6] sm:$0xff] %v341_v0 }
  0x17 PF: > { %v1651_v1 = vld [vmem:[%s2230_s3 + $0x170] sm:$0xff]  ;;  %v1656_v2 = vld [vmem:[%s2230_s3 + $0x168] sm:$0xff]  ;;  %v1661_v3 = vld [vmem:[%s2230_s3 + $0x158] sm:$0xff]  ;;  %v2234_v5 = vmov 0.0   ;;  %vm1574_vm0 = vmmov 0   ;;  %s739_s8 = sadd.s32 1, %s1628_s25 }
  0x18   : > { %395 = vmatprep.subr.mxu0 %v1651_v1  ;;  %v1667_v4 = vld [vmem:[%s2230_s3 + $0x150] sm:$0xff]  ;;  %1342 = vmatprep.subr.mxu1 %v2234_v5  ;;  %v1674_v6 = vld [vmem:[%s2230_s3 + $0x140] sm:$0xff]  ;;  %v1681_v7 = vld [vmem:[%s2230_s3 + $0x138] sm:$0xff]  ;;  %s913_s9 = sadd.s32 2, %s1628_s25  ;;  %s1087_s11 = sadd.s32 3, %s1628_s25 }
  0x19   : > { %396 = vmatpush1.msra.mxu0 %v1656_v2  ;;  %459 = vmatprep.mubr.f32.mxu0 %v2234_v5  ;;  %v1689_v8 = vld [vmem:[%s2230_s3 + $0x128] sm:$0xff]  ;;  %v1695_v9 = vld [vmem:[%s2230_s3 + $0x120] sm:$0xff]  ;;  %v1701_v10 = vld [vmem:[%s2230_s3 + $0x110] sm:$0xff] }
  0x1a   : > { %397 = vmatprep.subr.mxu0 %v1661_v3  ;;  %1374 = vmatprep.mubr.msk.f32.mxu1 %vm1574_vm0, %v2234_v5  ;;  %v1707_v11 = vld [vmem:[%s2230_s3 + $0x108] sm:$0xff]  ;;  %v1713_v12 = vld [vmem:[%s2230_s3 + $0xf8] sm:$0xff]  ;;  %v1719_v13 = vld [vmem:[%s2230_s3 + $0xf0] sm:$0xff] }
  0x1b   : > { %398 = vmatpush1.msra.mxu0 %v1667_v4  ;;  %v1725_v14 = vld [vmem:[%s2230_s3 + $0xe0] sm:$0xff]  ;;  %v1730_v15 = vld [vmem:[%s2230_s3 + $0x178] sm:$0xff]  ;;  %v1748_v18 = vld [vmem:[%s2230_s3 + $0xc8] sm:$0xff] }
  0x1c   : > { %399 = vmatprep.subr.mxu0 %v1674_v6  ;;  %v1736_v16 = vld [vmem:[%s2230_s3 + $0xd8] sm:$0xff]  ;;  %1343 = vmatpush3.msra.mxu1 %v1730_v15  ;;  %v1742_v17 = vld [vmem:[%s2230_s3 + $0x160] sm:$0xff]  ;;  %v1754_v19 = vld [vmem:[%s2230_s3 + $0x148] sm:$0xff] }
  0x1d   : > { %400 = vmatpush1.msra.mxu0 %v1681_v7  ;;  %1344 = vmatprep.subr.mxu1 %v2234_v5  ;;  %v1760_v20 = vld [vmem:[%s2230_s3 + $0xc0] sm:$0xff]  ;;  %v1767_v21 = vld [vmem:[%s2230_s3 + $0xb0] sm:$0xff]  ;;  %v1779_v23 = vld [vmem:[%s2230_s3 + $0xa8] sm:$0xff] }
  0x1e   : > { %401 = vmatprep.subr.mxu0 %v1689_v8  ;;  %1345 = vmatpush3.msra.mxu1 %v1742_v17  ;;  %v1773_v22 = vld [vmem:[%s2230_s3 + $0x130] sm:$0xff]  ;;  %v1786_v24 = vld [vmem:[%s2230_s3 + $0x98] sm:$0xff]  ;;  %v1805_v27 = vld [vmem:[%s2230_s3 + $0x80] sm:$0xff] }
  0x1f   : > { %402 = vmatpush1.msra.mxu0 %v1695_v9  ;;  %1346 = vmatprep.subr.mxu1 %v2234_v5  ;;  %v1792_v25 = vld [vmem:[%s2230_s3 + $0x118] sm:$0xff]  ;;  %v1798_v26 = vld [vmem:[%s2230_s3 + $0x90] sm:$0xff]  ;;  %v1811_v28 = vld [vmem:[%s2230_s3 + $0x100] sm:$0xff] }
  0x20   : > { %403 = vmatprep.subr.mxu0 %v1701_v10  ;;  %1347 = vmatpush3.msra.mxu1 %v1754_v19  ;;  %v1817_v29 = vld [vmem:[%s2230_s3 + $0x78] sm:$0xff]  ;;  %v1824_v30 = vld [vmem:[%s2230_s3 + $0x68] sm:$0xff]  ;;  %v1836_v32 = vld [vmem:[%s2230_s3 + $0x60] sm:$0xff] }
  0x21   : > { %404 = vmatpush1.msra.mxu0 %v1707_v11  ;;  %1348 = vmatprep.subr.mxu1 %v2234_v5  ;;  %v1830_v31 = vld [vmem:[%s2230_s3 + $0xe8] sm:$0xff]  ;;  %v1843_v33 = vld [vmem:[%s2230_s3 + $0x50] sm:$0xff]  ;;  %v1862_v36 = vld [vmem:[%s2230_s3 + $0x38] sm:$0xff] }
  0x22   : > { %405 = vmatprep.subr.mxu0 %v1713_v12  ;;  %1349 = vmatpush3.msra.mxu1 %v1773_v22  ;;  %v1849_v34 = vld [vmem:[%s2230_s3 + $0xd0] sm:$0xff]  ;;  %v1855_v35 = vld [vmem:[%s2230_s3 + $0x48] sm:$0xff]  ;;  %v1868_v37 = vld [vmem:[%s2230_s3 + $0xb8] sm:$0xff] }
  0x23   : > { %406 = vmatpush1.msra.mxu0 %v1719_v13  ;;  %1350 = vmatprep.subr.mxu1 %v2234_v5  ;;  %v1874_v38 = vld [vmem:[%s2230_s3 + $0x30] sm:$0xff]  ;;  %v1881_v39 = vld [vmem:[%s2230_s3 + $0x20] sm:$0xff]  ;;  %v1893_v41 = vld [vmem:[%s2230_s3 + $0x18] sm:$0xff] }
  0x24   : > { %407 = vmatprep.subr.mxu0 %v1725_v14  ;;  %1351 = vmatpush3.msra.mxu1 %v1792_v25  ;;  %v1887_v40 = vld [vmem:[%s2230_s3 + $0xa0] sm:$0xff]  ;;  %v1900_v42 = vld [vmem:[%s2230_s3 + $0x8] sm:$0xff]  ;;  %v1925_v46 = vld [vmem:[%s2230_s3 + $0x70] sm:$0xff] }
  0x25   : > { %408 = vmatpush1.msra.mxu0 %v1736_v16  ;;  %1352 = vmatprep.subr.mxu1 %v2234_v5  ;;  %2240 = vst [vmem:[#allocation2_spill] sm:$0xff] %v1900_v42  ;;  %v1906_v43 = vld [vmem:[%s2230_s3 + $0x88] sm:$0xff]  ;;  %v1912_v44 = vld [vmem:[%s2230_s3] sm:$0xff]  ;;  %v1934_v47 = vld [vmem:[%s2230_s3 + $0x58] sm:$0xff] }
  0x26   : > { %409 = vmatprep.subr.mxu0 %v1748_v18  ;;  %1353 = vmatpush3.msra.mxu1 %v1811_v28  ;;  %2241 = vst [vmem:[#allocation3_spill] sm:$0xff] %v1912_v44  ;;  %v1919_v45 = vld [vmem:[%s2233_s6] sm:$0xff]  ;;  %v1951_v49 = vld [vmem:[%s2230_s3 + $0x28] sm:$0xff]  ;;  %v1960_v50 = vld [vmem:[%s2230_s3 + $0x10] sm:$0xff] }
  0x27   : > { %410 = vmatpush1.msra.mxu0 %v1760_v20  ;;  %1354 = vmatprep.subr.mxu1 %v2234_v5  ;;  %v1942_v48 = vld [vmem:[%s2230_s3 + $0x40] sm:$0xff]  ;;  %2242 = vst [vmem:[#allocation4_spill] sm:$0xff] %v1951_v49  ;;  %2243 = vst [vmem:[#allocation5_spill] sm:$0xff] %v1960_v50  ;;  %v537_v56 = vld [vmem:[%s1640_s10 + $0x8] sm:$0xff] }
  0x28   : > { %411 = vmatprep.subr.mxu0 %v1767_v21  ;;  %1355 = vmatpush3.msra.mxu1 %v1830_v31  ;;  %v536_v51 = vld [vmem:[%s1640_s10] sm:$0xff] }
  0x29   : > { %412 = vmatpush1.msra.mxu0 %v1779_v23  ;;  %1356 = vmatprep.subr.mxu1 %v2234_v5  ;;  %v2036_v0 = vld [vmem:[%s2231_s4] ss:$0 sm:$0xff] }
  0x2a   : > { %413 = vmatprep.subr.mxu0 %v1786_v24  ;;  %1357 = vmatpush3.msra.mxu1 %v1849_v34 }
  0x2b   : > { %414 = vmatpush1.msra.mxu0 %v1798_v26  ;;  %1358 = vmatprep.subr.mxu1 %v2234_v5 }
  0x2c   : > { %415 = vmatprep.subr.mxu0 %v1805_v27  ;;  %1359 = vmatpush3.msra.mxu1 %v1868_v37 }
  0x2d   : > { %416 = vmatpush1.msra.mxu0 %v1817_v29  ;;  %1360 = vmatprep.subr.mxu1 %v2234_v5 }
  0x2e   : > { %417 = vmatprep.subr.mxu0 %v1824_v30  ;;  %1361 = vmatpush3.msra.mxu1 %v1887_v40 }
  0x2f   : > { %418 = vmatpush1.msra.mxu0 %v1836_v32  ;;  %1362 = vmatprep.subr.mxu1 %v2234_v5 }
  0x30   : > { %419 = vmatprep.subr.mxu0 %v1843_v33  ;;  %1363 = vmatpush3.msra.mxu1 %v1906_v43 }
  0x31   : > { %420 = vmatpush1.msra.mxu0 %v1855_v35  ;;  %1364 = vmatprep.subr.mxu1 %v2234_v5 }
  0x32   : > { %421 = vmatprep.subr.mxu0 %v1862_v36  ;;  %1365 = vmatpush3.msra.mxu1 %v1925_v46 }
  0x33   : > { %422 = vmatpush1.msra.mxu0 %v1874_v38  ;;  %1366 = vmatprep.subr.mxu1 %v2234_v5 }
  0x34   : > { %423 = vmatprep.subr.mxu0 %v1881_v39  ;;  %1367 = vmatpush3.msra.mxu1 %v1934_v47 }
  0x35   : > { %424 = vmatpush1.msra.mxu0 %v1893_v41  ;;  %1368 = vmatprep.subr.mxu1 %v2234_v5 }
  0x36   : > { %425 = vmatprep.subr.mxu0 %v1900_v42  ;;  %1369 = vmatpush3.msra.mxu1 %v1942_v48 }
  0x37   : > { %426 = vmatpush1.msra.mxu0 %v1912_v44  ;;  %1370 = vmatprep.subr.mxu1 %v2234_v5 }
  0x38   : > { %460 = vmatmul.mubr.f32.vlgmr.msra.gmra.mxu0 %v1919_v45  ;;  %572 = vmatprep.subr.mxu0 %v1651_v1 }
  0x39   : > { %573 = vmatpush1.msra.mxu0 %v1656_v2  ;;  %1371 = vmatpush3.msra.mxu1 %v1951_v49 }
  0x3a   : > { %574 = vmatprep.subr.mxu0 %v1661_v3  ;;  %1372 = vmatprep.subr.mxu1 %v2234_v5 }
  0x3b   : > { %575 = vmatpush1.msra.mxu0 %v1667_v4  ;;  %1373 = vmatpush3.msra.mxu1 %v1960_v50 }
  0x3c   : > { %576 = vmatprep.subr.mxu0 %v1674_v6  ;;  %1375 = vmatmul.mubr.f32.vlgmr.msra.gmra.mxu1 %v1919_v45 }
  0x3d   : > { %577 = vmatpush1.msra.mxu0 %v1681_v7  ;;  %1377 = vmatprep.subr.mxu1 %v2234_v5 }
  0x3e   : > { %578 = vmatprep.subr.mxu0 %v1689_v8  ;;  %1378 = vmatpush3.msra.mxu1 %v1730_v15 }
  0x3f   : > { %579 = vmatpush1.msra.mxu0 %v1695_v9  ;;  %1379 = vmatprep.subr.mxu1 %v2234_v5 }
  0x40   : > { %580 = vmatprep.subr.mxu0 %v1701_v10  ;;  %1380 = vmatpush3.msra.mxu1 %v1742_v17 }
  0x41   : > { %581 = vmatpush1.msra.mxu0 %v1707_v11  ;;  %1381 = vmatprep.subr.mxu1 %v2234_v5 }
  0x42   : > { %582 = vmatprep.subr.mxu0 %v1713_v12  ;;  %1382 = vmatpush3.msra.mxu1 %v1754_v19 }
  0x43   : > { %583 = vmatpush1.msra.mxu0 %v1719_v13  ;;  %1383 = vmatprep.subr.mxu1 %v2234_v5 }
  0x44   : > { %584 = vmatprep.subr.mxu0 %v1725_v14  ;;  %1384 = vmatpush3.msra.mxu1 %v1773_v22 }
  0x45   : > { %585 = vmatpush1.msra.mxu0 %v1736_v16  ;;  %1385 = vmatprep.subr.mxu1 %v2234_v5 }
  0x46   : > { %586 = vmatprep.subr.mxu0 %v1748_v18  ;;  %1386 = vmatpush3.msra.mxu1 %v1792_v25 }
  0x47   : > { %587 = vmatpush1.msra.mxu0 %v1760_v20  ;;  %1387 = vmatprep.subr.mxu1 %v2234_v5 }
  0x48   : > { %588 = vmatprep.subr.mxu0 %v1767_v21  ;;  %1388 = vmatpush3.msra.mxu1 %v1811_v28 }
  0x49   : > { %589 = vmatpush1.msra.mxu0 %v1779_v23  ;;  %1389 = vmatprep.subr.mxu1 %v2234_v5 }
  0x4a   : > { %590 = vmatprep.subr.mxu0 %v1786_v24  ;;  %1390 = vmatpush3.msra.mxu1 %v1830_v31 }
  0x4b   : > { %591 = vmatpush1.msra.mxu0 %v1798_v26  ;;  %1391 = vmatprep.subr.mxu1 %v2234_v5 }
  0x4c   : > { %592 = vmatprep.subr.mxu0 %v1805_v27  ;;  %1392 = vmatpush3.msra.mxu1 %v1849_v34 }
  0x4d   : > { %593 = vmatpush1.msra.mxu0 %v1817_v29  ;;  %1393 = vmatprep.subr.mxu1 %v2234_v5 }
  0x4e   : > { %594 = vmatprep.subr.mxu0 %v1824_v30  ;;  %1394 = vmatpush3.msra.mxu1 %v1868_v37 }
  0x4f   : > { %595 = vmatpush1.msra.mxu0 %v1836_v32  ;;  %1395 = vmatprep.subr.mxu1 %v2234_v5 }
  0x50   : > { %596 = vmatprep.subr.mxu0 %v1843_v33  ;;  %1396 = vmatpush3.msra.mxu1 %v1887_v40 }
  0x51   : > { %597 = vmatpush1.msra.mxu0 %v1855_v35  ;;  %1397 = vmatprep.subr.mxu1 %v2234_v5 }
  0x52   : > { %598 = vmatprep.subr.mxu0 %v1862_v36  ;;  %1398 = vmatpush3.msra.mxu1 %v1906_v43 }
  0x53   : > { %599 = vmatpush1.msra.mxu0 %v1874_v38  ;;  %1399 = vmatprep.subr.mxu1 %v2234_v5 }
  0x54   : > { %600 = vmatprep.subr.mxu0 %v1881_v39  ;;  %1400 = vmatpush3.msra.mxu1 %v1925_v46 }
  0x55   : > { %601 = vmatpush1.msra.mxu0 %v1893_v41  ;;  %1401 = vmatprep.subr.mxu1 %v2234_v5 }
  0x56   : > { %602 = vmatprep.subr.mxu0 %v1900_v42  ;;  %1402 = vmatpush3.msra.mxu1 %v1934_v47 }
  0x57   : > { %603 = vmatpush1.msra.mxu0 %v1912_v44  ;;  %636 = vmatprep.mubr.f32.mxu0 %v2234_v5 }
  0x58   : > { %1403 = vmatprep.subr.mxu1 %v2234_v5  ;;  %1409 = vmatprep.mubr.msk.f32.mxu1 %vm1574_vm0, %v2234_v5 }
  0x59   : > { %1404 = vmatpush3.msra.mxu1 %v1942_v48  ;;  %746 = vmatprep.subr.mxu0 %v1651_v1 }
  0x5a   : > { %1405 = vmatprep.subr.mxu1 %v2234_v5 }
  0x5b   : > { %1406 = vmatpush3.msra.mxu1 %v1951_v49 }
  0x5c   : > { %1407 = vmatprep.subr.mxu1 %v2234_v5 }
  0x5d   : > { %1408 = vmatpush3.msra.mxu1 %v1960_v50 }
  0x5e   : > { %1412 = vmatprep.subr.mxu1 %v2234_v5 }
  0xf8   : > { %v461_v52 = vpop.f32.mrf.mxu0 }
  0xf9   : > { %v539_v53 = vadd.f32 %v536_v51, %v461_v52 }
  0xfa   : > { %v463_v55 = vpop.f32.mrf.mxu0 }
  0xfb   : > { %v1250_v54 = vmul.f32 -1.442695, %v539_v53  ;;  %v546_v57 = vadd.f32 %v537_v56, %v463_v55 }
  0xfc   : > { %v532_v58 = vpop.f32.mrf.mxu1 }
  0xfd   : > { %1509 = vpow2.f32 %v1250_v54  ;;  %v1251_v59 = vmul.f32 -1.442695, %v546_v57  ;;  %v559_v52 = vadd.f32 %v2036_v0, %v532_v58  ;;  %v538_v54 = vld [vmem:[%s1640_s10 + $0x10] sm:$0xff] }
  0xfe   : > { %v1376_v60 = vpop.f32.mrf.mxu1 }
  0xff   : > { %1511 = vpow2.f32 %v1251_v59  ;;  %v2043_v59 = vld [vmem:[%s2227_s0] sm:$0xff] }
 0x10a   : > { %v1510_v61 = vpop.eup %1509 }
 0x10b   : > { %v543_v62 = vadd.f32 1.0, %v1510_v61  ;;  %v567_v61 = vstv %s1628_s25 }
 0x10c   : > { %v1512_v63 = vpop.eup %1511  ;;  %vm568_vm1 = vcmp.lt.s32.totalorder %v567_v61, %v2043_v59  ;;  %v1254_v61 = vld [vmem:[%s1640_s10 + $0x20] sm:$0xff] }
 0x10d   : > { %1513 = vrcp.f32 %v543_v62  ;;  %v550_v51 = vadd.f32 1.0, %v1512_v63 }
 0x10f   : > { %1515 = vrcp.f32 %v550_v51 }
 0x11a   : > { %v1514_v53 = vpop.eup %1513 }
 0x11b   : > { %v560_v55 = vmul.f32 %v1514_v53, %v559_v52  ;;  %v2244_v53 = vmov 0.0  }
 0x11c   : > { %v1516_v57 = vpop.eup %1515 }
 0x11d   : > { %v561_v56 = vadd.f32 %v560_v55, %v538_v54  ;;  %v563_v60 = vsub.f32 1.0, %v1516_v57  ;;  %v565_v63 = vmul.f32 %v1516_v57, %v1919_v45 }
 0x11f   : > { %1517 = vtanh.f32 %v561_v56 }
 0x12c   : > { %v1518_v62 = vpop.eup %1517 }
 0x12d   : > { %v564_v5 = vmul.f32 %v1518_v62, %v563_v60 }
 0x12f   : > { %v566_v58 = vadd.f32 %v565_v63, %v564_v5  ;;  %v1253_v5 = vld [vmem:[%s1640_s10 + $0x18] sm:$0xff] }
 0x131   : > { %v2049_v51 = vsel %vm568_vm1, %v566_v58, %v1919_v45  ;;  %v570_v52 = vsel %vm568_vm1, %v566_v58, 0.0 }
 0x132   : > { %571 = vst [vmem:[%s1635_s7] sm:$0xff] %v570_v52  ;;  %637 = vmatmul.mubr.f32.vlgmr.msra.gmra.mxu0 %v2049_v51  ;;  %1410 = vmatmul.mubr.f32.vlgmr.msra.gmra.mxu1 %v2049_v51 }
 0x133   : > { %747 = vmatpush1.msra.mxu0 %v1656_v2  ;;  %1413 = vmatpush3.msra.mxu1 %v1730_v15 }
 0x134   : > { %748 = vmatprep.subr.mxu0 %v1661_v3  ;;  %1414 = vmatprep.subr.mxu1 %v2244_v53 }
 0x135   : > { %749 = vmatpush1.msra.mxu0 %v1667_v4  ;;  %1415 = vmatpush3.msra.mxu1 %v1742_v17 }
 0x136   : > { %750 = vmatprep.subr.mxu0 %v1674_v6  ;;  %1416 = vmatprep.subr.mxu1 %v2244_v53 }
 0x137   : > { %751 = vmatpush1.msra.mxu0 %v1681_v7  ;;  %1417 = vmatpush3.msra.mxu1 %v1754_v19 }
 0x138   : > { %752 = vmatprep.subr.mxu0 %v1689_v8  ;;  %1418 = vmatprep.subr.mxu1 %v2244_v53 }
 0x139   : > { %753 = vmatpush1.msra.mxu0 %v1695_v9  ;;  %1419 = vmatpush3.msra.mxu1 %v1773_v22 }
 0x13a   : > { %754 = vmatprep.subr.mxu0 %v1701_v10  ;;  %1420 = vmatprep.subr.mxu1 %v2244_v53 }
 0x13b   : > { %755 = vmatpush1.msra.mxu0 %v1707_v11  ;;  %1421 = vmatpush3.msra.mxu1 %v1792_v25 }
 0x13c   : > { %756 = vmatprep.subr.mxu0 %v1713_v12  ;;  %1422 = vmatprep.subr.mxu1 %v2244_v53 }
 0x13d   : > { %757 = vmatpush1.msra.mxu0 %v1719_v13  ;;  %1423 = vmatpush3.msra.mxu1 %v1811_v28 }
 0x13e   : > { %758 = vmatprep.subr.mxu0 %v1725_v14  ;;  %1424 = vmatprep.subr.mxu1 %v2244_v53 }
 0x13f   : > { %759 = vmatpush1.msra.mxu0 %v1736_v16  ;;  %1425 = vmatpush3.msra.mxu1 %v1830_v31 }
 0x140   : > { %760 = vmatprep.subr.mxu0 %v1748_v18  ;;  %1426 = vmatprep.subr.mxu1 %v2244_v53 }
 0x141   : > { %761 = vmatpush1.msra.mxu0 %v1760_v20  ;;  %1427 = vmatpush3.msra.mxu1 %v1849_v34 }
 0x142   : > { %762 = vmatprep.subr.mxu0 %v1767_v21  ;;  %1428 = vmatprep.subr.mxu1 %v2244_v53 }
 0x143   : > { %763 = vmatpush1.msra.mxu0 %v1779_v23  ;;  %1429 = vmatpush3.msra.mxu1 %v1868_v37 }
 0x144   : > { %764 = vmatprep.subr.mxu0 %v1786_v24  ;;  %1430 = vmatprep.subr.mxu1 %v2244_v53 }
 0x145   : > { %765 = vmatpush1.msra.mxu0 %v1798_v26  ;;  %1431 = vmatpush3.msra.mxu1 %v1887_v40 }
 0x146   : > { %766 = vmatprep.subr.mxu0 %v1805_v27  ;;  %1432 = vmatprep.subr.mxu1 %v2244_v53 }
 0x147   : > { %767 = vmatpush1.msra.mxu0 %v1817_v29  ;;  %1433 = vmatpush3.msra.mxu1 %v1906_v43 }
 0x148   : > { %768 = vmatprep.subr.mxu0 %v1824_v30  ;;  %1434 = vmatprep.subr.mxu1 %v2244_v53 }
 0x149   : > { %769 = vmatpush1.msra.mxu0 %v1836_v32  ;;  %1435 = vmatpush3.msra.mxu1 %v1925_v46 }
 0x14a   : > { %770 = vmatprep.subr.mxu0 %v1843_v33  ;;  %1436 = vmatprep.subr.mxu1 %v2244_v53 }
 0x14b   : > { %771 = vmatpush1.msra.mxu0 %v1855_v35  ;;  %1437 = vmatpush3.msra.mxu1 %v1934_v47 }
 0x14c   : > { %772 = vmatprep.subr.mxu0 %v1862_v36  ;;  %1438 = vmatprep.subr.mxu1 %v2244_v53 }
 0x14d   : > { %773 = vmatpush1.msra.mxu0 %v1874_v38  ;;  %1439 = vmatpush3.msra.mxu1 %v1942_v48 }
 0x14e   : > { %774 = vmatprep.subr.mxu0 %v1881_v39  ;;  %1440 = vmatprep.subr.mxu1 %v2244_v53 }
 0x14f   : > { %775 = vmatpush1.msra.mxu0 %v1893_v41  ;;  %1441 = vmatpush3.msra.mxu1 %v1951_v49  ;;  %v1255_v49 = vld [vmem:[%s1640_s10 + $0x28] sm:$0xff] }
 0x150   : > { %776 = vmatprep.subr.mxu0 %v1900_v42  ;;  %1442 = vmatprep.subr.mxu1 %v2244_v53 }
 0x151   : > { %777 = vmatpush1.msra.mxu0 %v1912_v44  ;;  %810 = vmatprep.mubr.f32.mxu0 %v2244_v53 }
 0x152   : > { %1443 = vmatpush3.msra.mxu1 %v1960_v50  ;;  %1444 = vmatprep.mubr.msk.f32.mxu1 %vm1574_vm0, %v2244_v53 }
 0x153   : > { %920 = vmatprep.subr.mxu0 %v1651_v1  ;;  %1447 = vmatprep.subr.mxu1 %v2244_v53 }
 0x1f2   : > { %v638_v45 = vpop.f32.mrf.mxu0  ;;  %v709_v54 = vpop.f32.mrf.mxu1 }
 0x1f3   : > { %v717_v55 = vadd.f32 %v1253_v5, %v638_v45  ;;  %v731_v44 = vadd.f32 %v2036_v0, %v709_v54 }
 0x1f4   : > { %v1411_v56 = vpop.f32.mrf.mxu1  ;;  %v640_v60 = vpop.f32.mrf.mxu0 }
 0x1f5   : > { %v1256_v57 = vmul.f32 -1.442695, %v717_v55  ;;  %v724_v62 = vadd.f32 %v1254_v61, %v640_v60 }
 0x1f7   : > { %1519 = vpow2.f32 %v1256_v57  ;;  %v1257_v63 = vmul.f32 -1.442695, %v724_v62  ;;  %v740_v57 = vstv %s739_s8 }
 0x1f8   : > { %vm741_vm2 = vcmp.lt.s32.totalorder %v740_v57, %v2043_v59 }
 0x1f9   : > { %1521 = vpow2.f32 %v1257_v63 }
 0x204   : > { %v1520_v58 = vpop.eup %1519 }
 0x205   : > { %v721_v52 = vadd.f32 1.0, %v1520_v58 }
 0x206   : > { %v1522_v1 = vpop.eup %1521 }
 0x207   : > { %1523 = vrcp.f32 %v721_v52  ;;  %v728_v50 = vadd.f32 1.0, %v1522_v1 }
 0x209   : > { %1525 = vrcp.f32 %v728_v50 }
 0x214   : > { %v1524_v42 = vpop.eup %1523 }
 0x215   : > { %v732_v5 = vmul.f32 %v1524_v42, %v731_v44  ;;  %v1266_v42 = vld [vmem:[%s1640_s10 + $0x50] sm:$0xff] }
 0x216   : > { %v1526_v55 = vpop.eup %1525 }
 0x217   : > { %v733_v45 = vadd.f32 %v1255_v49, %v732_v5  ;;  %v735_v56 = vsub.f32 1.0, %v1526_v55  ;;  %v737_v62 = vmul.f32 %v1526_v55, %v2049_v51 }
 0x219   : > { %1527 = vtanh.f32 %v733_v45  ;;  %v1088_v45 = vstv %s1087_s11 }
 0x21a   : > { %vm1089_vm4 = vcmp.lt.s32.totalorder %v1088_v45, %v2043_v59 }
 0x226   : > { %v1528_v60 = vpop.eup %1527 }
 0x227   : > { %v736_v61 = vmul.f32 %v1528_v60, %v735_v56 }
 0x229   : > { %v738_v63 = vadd.f32 %v737_v62, %v736_v61 }
 0x22b   : > { %v2129_v54 = vsel %vm741_vm2, %v738_v63, %v2049_v51  ;;  %v743_v58 = vsel %vm741_vm2, %v738_v63, 0.0 }
 0x22c   : > { %1258 = vst [vmem:[%s1635_s7 + $0x8] sm:$0xff] %v743_v58  ;;  %811 = vmatmul.mubr.f32.vlgmr.msra.gmra.mxu0 %v2129_v54  ;;  %1445 = vmatmul.mubr.f32.vlgmr.msra.gmra.mxu1 %v2129_v54 }
 0x22d   : > { %921 = vmatpush1.msra.mxu0 %v1656_v2  ;;  %1448 = vmatpush3.msra.mxu1 %v1730_v15  ;;  %v2245_v2 = vld [vmem:[#allocation4_spill] sm:$0xff] }
 0x22e   : > { %922 = vmatprep.subr.mxu0 %v1661_v3  ;;  %1449 = vmatprep.subr.mxu1 %v2244_v53  ;;  %v2246_v3 = vld [vmem:[#allocation2_spill] sm:$0xff] }
 0x22f   : > { %923 = vmatpush1.msra.mxu0 %v1667_v4  ;;  %1450 = vmatpush3.msra.mxu1 %v1742_v17  ;;  %v2247_v4 = vld [vmem:[#allocation3_spill] sm:$0xff] }
 0x230   : > { %924 = vmatprep.subr.mxu0 %v1674_v6  ;;  %1451 = vmatprep.subr.mxu1 %v2244_v53  ;;  %v2248_v6 = vld [vmem:[#allocation5_spill] sm:$0xff] }
 0x231   : > { %925 = vmatpush1.msra.mxu0 %v1681_v7  ;;  %1452 = vmatpush3.msra.mxu1 %v1754_v19  ;;  %v1259_v7 = vld [vmem:[%s1640_s10 + $0x30] sm:$0xff] }
 0x232   : > { %926 = vmatprep.subr.mxu0 %v1689_v8  ;;  %1453 = vmatprep.subr.mxu1 %v2244_v53 }
 0x233   : > { %927 = vmatpush1.msra.mxu0 %v1695_v9  ;;  %1454 = vmatpush3.msra.mxu1 %v1773_v22 }
 0x234   : > { %928 = vmatprep.subr.mxu0 %v1701_v10  ;;  %1455 = vmatprep.subr.mxu1 %v2244_v53 }
 0x235   : > { %929 = vmatpush1.msra.mxu0 %v1707_v11  ;;  %1456 = vmatpush3.msra.mxu1 %v1792_v25 }
 0x236   : > { %930 = vmatprep.subr.mxu0 %v1713_v12  ;;  %1457 = vmatprep.subr.mxu1 %v2244_v53 }
 0x237   : > { %931 = vmatpush1.msra.mxu0 %v1719_v13  ;;  %1458 = vmatpush3.msra.mxu1 %v1811_v28  ;;  %v914_v28 = vstv %s913_s9 }
 0x238   : > { %932 = vmatprep.subr.mxu0 %v1725_v14  ;;  %1459 = vmatprep.subr.mxu1 %v2244_v53  ;;  %v1260_v14 = vld [vmem:[%s1640_s10 + $0x38] sm:$0xff]  ;;  %vm915_vm3 = vcmp.lt.s32.totalorder %v914_v28, %v2043_v59 }
 0x239   : > { %933 = vmatpush1.msra.mxu0 %v1736_v16  ;;  %1460 = vmatpush3.msra.mxu1 %v1830_v31 }
 0x23a   : > { %934 = vmatprep.subr.mxu0 %v1748_v18  ;;  %1461 = vmatprep.subr.mxu1 %v2244_v53 }
 0x23b   : > { %935 = vmatpush1.msra.mxu0 %v1760_v20  ;;  %1462 = vmatpush3.msra.mxu1 %v1849_v34 }
 0x23c   : > { %936 = vmatprep.subr.mxu0 %v1767_v21  ;;  %1463 = vmatprep.subr.mxu1 %v2244_v53 }
 0x23d   : > { %937 = vmatpush1.msra.mxu0 %v1779_v23  ;;  %1464 = vmatpush3.msra.mxu1 %v1868_v37  ;;  %v1261_v23 = vld [vmem:[%s1640_s10 + $0x40] sm:$0xff] }
 0x23e   : > { %938 = vmatprep.subr.mxu0 %v1786_v24  ;;  %1465 = vmatprep.subr.mxu1 %v2244_v53 }
 0x23f   : > { %939 = vmatpush1.msra.mxu0 %v1798_v26  ;;  %1466 = vmatpush3.msra.mxu1 %v1887_v40 }
 0x240   : > { %940 = vmatprep.subr.mxu0 %v1805_v27  ;;  %1467 = vmatprep.subr.mxu1 %v2244_v53 }
 0x241   : > { %941 = vmatpush1.msra.mxu0 %v1817_v29  ;;  %1468 = vmatpush3.msra.mxu1 %v1906_v43 }
 0x242   : > { %942 = vmatprep.subr.mxu0 %v1824_v30  ;;  %1469 = vmatprep.subr.mxu1 %v2244_v53 }
 0x243   : > { %943 = vmatpush1.msra.mxu0 %v1836_v32  ;;  %1470 = vmatpush3.msra.mxu1 %v1925_v46 }
 0x244   : > { %944 = vmatprep.subr.mxu0 %v1843_v33  ;;  %1471 = vmatprep.subr.mxu1 %v2244_v53 }
 0x245   : > { %945 = vmatpush1.msra.mxu0 %v1855_v35  ;;  %1472 = vmatpush3.msra.mxu1 %v1934_v47  ;;  %v1265_v35 = vld [vmem:[%s1640_s10 + $0x48] sm:$0xff] }
 0x246   : > { %946 = vmatprep.subr.mxu0 %v1862_v36  ;;  %1473 = vmatprep.subr.mxu1 %v2244_v53 }
 0x247   : > { %947 = vmatpush1.msra.mxu0 %v1874_v38  ;;  %1474 = vmatpush3.msra.mxu1 %v1942_v48 }
 0x248   : > { %948 = vmatprep.subr.mxu0 %v1881_v39  ;;  %1475 = vmatprep.subr.mxu1 %v2244_v53 }
 0x249   : > { %949 = vmatpush1.msra.mxu0 %v1893_v41  ;;  %1476 = vmatpush3.msra.mxu1 %v2245_v2 }
 0x24a   : > { %950 = vmatprep.subr.mxu0 %v2246_v3  ;;  %1477 = vmatprep.subr.mxu1 %v2244_v53 }
 0x24b   : > { %951 = vmatpush1.msra.mxu0 %v2247_v4  ;;  %984 = vmatprep.mubr.f32.mxu0 %v2244_v53 }
 0x24c   : > { %1478 = vmatpush3.msra.mxu1 %v2248_v6  ;;  %1479 = vmatprep.mubr.msk.f32.mxu1 %vm1574_vm0, %v2244_v53  ;;  %v1267_v53 = vld [vmem:[%s1640_s10 + $0x58] sm:$0xff] }
 0x2ec   : > { %v812_v8 = vpop.f32.mrf.mxu0  ;;  %v883_v9 = vpop.f32.mrf.mxu1 }
 0x2ed   : > { %v891_v10 = vadd.f32 %v1259_v7, %v812_v8  ;;  %v905_v21 = vadd.f32 %v2036_v0, %v883_v9 }
 0x2ee   : > { %v1446_v11 = vpop.f32.mrf.mxu1  ;;  %v814_v13 = vpop.f32.mrf.mxu0 }
 0x2ef   : > { %v1262_v12 = vmul.f32 -1.442695, %v891_v10  ;;  %v898_v15 = vadd.f32 %v1260_v14, %v814_v13 }
 0x2f1   : > { %1529 = vpow2.f32 %v1262_v12  ;;  %v1263_v16 = vmul.f32 -1.442695, %v898_v15 }
 0x2f3   : > { %1531 = vpow2.f32 %v1263_v16 }
 0x2fe   : > { %v1530_v17 = vpop.eup %1529 }
 0x2ff   : > { %v895_v18 = vadd.f32 1.0, %v1530_v17 }
 0x300   : > { %v1532_v19 = vpop.eup %1531 }
 0x301   : > { %1533 = vrcp.f32 %v895_v18  ;;  %v902_v20 = vadd.f32 1.0, %v1532_v19 }
 0x303   : > { %1535 = vrcp.f32 %v902_v20 }
 0x30e   : > { %v1534_v22 = vpop.eup %1533 }
 0x30f   : > { %v906_v24 = vmul.f32 %v1534_v22, %v905_v21 }
 0x310   : > { %v1536_v26 = vpop.eup %1535 }
 0x311   : > { %v907_v25 = vadd.f32 %v1261_v23, %v906_v24  ;;  %v909_v27 = vsub.f32 1.0, %v1536_v26  ;;  %v911_v31 = vmul.f32 %v1536_v26, %v2129_v54 }
 0x313   : > { %1537 = vtanh.f32 %v907_v25 }
 0x320   : > { %v1538_v29 = vpop.eup %1537 }
 0x321   : > { %v910_v30 = vmul.f32 %v1538_v29, %v909_v27 }
 0x323   : > { %v912_v32 = vadd.f32 %v911_v31, %v910_v30 }
 0x325   : > { %v916_v33 = vsel %vm915_vm3, %v912_v32, %v2129_v54  ;;  %v917_v34 = vsel %vm915_vm3, %v912_v32, 0.0 }
 0x326   : > { %1264 = vst [vmem:[%s1635_s7 + $0x10] sm:$0xff] %v917_v34  ;;  %985 = vmatmul.mubr.f32.vlgmr.msra.gmra.mxu0 %v916_v33  ;;  %1480 = vmatmul.mubr.f32.vlgmr.msra.gmra.mxu1 %v916_v33 }
 0x3e6   : > { %v986_v36 = vpop.f32.mrf.mxu0  ;;  %v1057_v37 = vpop.f32.mrf.mxu1 }
 0x3e7   : > { %v1065_v38 = vadd.f32 %v1265_v35, %v986_v36  ;;  %v1079_v50 = vadd.f32 %v2036_v0, %v1057_v37 }
 0x3e8   : > { %v1481_v39 = vpop.f32.mrf.mxu1  ;;  %v988_v41 = vpop.f32.mrf.mxu0 }
 0x3e9   : > { %v1268_v40 = vmul.f32 -1.442695, %v1065_v38  ;;  %v1072_v43 = vadd.f32 %v1266_v42, %v988_v41 }
 0x3eb   : > { %1539 = vpow2.f32 %v1268_v40  ;;  %v1269_v44 = vmul.f32 -1.442695, %v1072_v43 }
 0x3ed   : > { %1541 = vpow2.f32 %v1269_v44 }
 0x3f8   : > { %v1540_v46 = vpop.eup %1539 }
 0x3f9   : > { %v1069_v47 = vadd.f32 1.0, %v1540_v46 }
 0x3fa   : > { %v1542_v48 = vpop.eup %1541 }
 0x3fb   : > { %1543 = vrcp.f32 %v1069_v47  ;;  %v1076_v49 = vadd.f32 1.0, %v1542_v48 }
 0x3fd   : > { %1545 = vrcp.f32 %v1076_v49 }
 0x408   : > { %v1544_v51 = vpop.eup %1543 }
 0x409   : > { %v1080_v52 = vmul.f32 %v1544_v51, %v1079_v50 }
 0x40a   : > { %v1546_v5 = vpop.eup %1545 }
 0x40b   : > { %v1081_v1 = vadd.f32 %v1267_v53, %v1080_v52  ;;  %v1083_v55 = vsub.f32 1.0, %v1546_v5  ;;  %v1085_v60 = vmul.f32 %v1546_v5, %v916_v33 }
 0x40d   : > { %1547 = vtanh.f32 %v1081_v1 }
 0x41a   : > { %v1548_v56 = vpop.eup %1547 }
 0x41b   : > { %v1084_v57 = vmul.f32 %v1548_v56, %v1083_v55 }
 0x41d   : > { %v1086_v61 = vadd.f32 %v1085_v60, %v1084_v57 }
 0x41f   : > { %v1090_v62 = vsel %vm1089_vm4, %v1086_v61, %v916_v33  ;;  %v1091_v63 = vsel %vm1089_vm4, %v1086_v61, 0.0 }
 0x420   : > { %1270 = vst [vmem:[%s1635_s7 + $0x18] sm:$0xff] %v1091_v63  ;;  %1094 = vst [vmem:[%s2233_s6] sm:$0xff] %v1090_v62 }
 0x421 PF: > { %s17_s23 = sadd.s32 1, %s1571_s23   ;;  %s2249_s21 = smov %s1567_s22 }
 0x422   : > { %p14_p6 = scmp.ge.s32.totalorder %s17_s23, 4   ;;  %s2250_s22 = smov %s2252_s24 }
 0x424   :  { %16 = sbr.rel (!%p14_p6) target bundleno = 2 (0x2), region = 98 }

</bundles_post_ra>
